<compile_context>
chip_gen: v6e
topology: v6e:2x2x1
jax: 0.10.0
libtpu: 0.0.40
codegen_flags: <defaults>
</compile_context>

<pallas_src>
import functools

import jax
import jax.numpy as jnp
from jax import lax
from jax.experimental import pallas as pl
from jax.experimental.pallas import tpu as pltpu


def _cross_loss_kernel(v1_ref, v2_ref, v3_ref, out_ref, *, inv_tao, batch):
    p = pl.program_id(0)            # partial (parallel axis; 2 TCs on v7x)
    t = pl.program_id(1)            # batch-tile within this partial (reduction)
    n_t = pl.num_programs(1)

    # Zero this partial's accumulator block on the first reduction step.
    @pl.when(t == 0)
    def _():
        out_ref[...] = jnp.zeros_like(out_ref)

    v1 = v1_ref[...].astype(jnp.float32)
    v2 = v2_ref[...].astype(jnp.float32)
    v3 = v3_ref[...].astype(jnp.float32)

    # Per-row reductions over the lane axis D.
    dot12 = jnp.sum(v1 * v2, axis=-1, keepdims=True)
    dot13 = jnp.sum(v1 * v3, axis=-1, keepdims=True)
    ss1 = jnp.sum(v1 * v1, axis=-1, keepdims=True)
    ss2 = jnp.sum(v2 * v2, axis=-1, keepdims=True)
    ss3 = jnp.sum(v3 * v3, axis=-1, keepdims=True)

    # 1 / max(||v||, eps) == rsqrt(max(||v||^2, eps^2))  -> EUP rsqrt, no divides.
    # Per-norm clamping matches torch.nn.functional.cosine_similarity semantics.
    eps2 = jnp.float32(1e-16)
    r1 = lax.rsqrt(jnp.maximum(ss1, eps2))
    r2 = lax.rsqrt(jnp.maximum(ss2, eps2))
    r3 = lax.rsqrt(jnp.maximum(ss3, eps2))

    inv_tao_f = jnp.float32(inv_tao)          # hoisted 1/tao (compile-time constant)
    sim12 = dot12 * (r1 * r2) * inv_tao_f
    sim13 = dot13 * (r1 * r3) * inv_tao_f

    # -log(exp(s12) / (exp(s12) + exp(s13))) == softplus(s13 - s12), stable form.
    d = sim13 - sim12
    per_row = jnp.maximum(d, 0.0) + jnp.log1p(jnp.exp(-jnp.abs(d)))     # (TB, 1)

    # Mask rows that fall past the true batch size (padded last tile / partial).
    tb = per_row.shape[0]
    row0 = (p * n_t + t) * tb
    row_ids = row0 + lax.broadcasted_iota(jnp.int32, (tb, 1), 0)
    per_row = jnp.where(row_ids < batch, per_row, 0.0)

    # Accumulate this tile's contribution (broadcast scalar over the resident block).
    out_ref[...] += jnp.sum(per_row)


def my_cross_loss(vector1, vector2, vector3, *, tao=0.5, ita=1.0,
                  block_rows=512, num_partials=2):
    """Pallas-TPU My_Cross_Loss.forward (ita unused, as in the reference)."""
    del ita  # not used in the reference forward pass
    assert vector1.shape == vector2.shape == vector3.shape
    B, D = vector1.shape
    esize = jnp.dtype(vector1.dtype).itemsize

    # Number of independent partial sums (leading "parallel" grid axis).
    np_ = max(1, min(int(num_partials), pl.cdiv(B, 8)))

    # Batch tile: multiple of 8 sublanes, capped so 3 double-buffered input
    # tiles stay well under the smallest (v7x, 64 MiB) VMEM budget.
    vmem_budget = 24 * 1024 * 1024
    tb_cap = max(8, (vmem_budget // (3 * 2 * D * esize)) // 8 * 8)
    rows_per_partial = pl.cdiv(B, np_)
    tb = min(int(block_rows), int(tb_cap), ((rows_per_partial + 7) // 8) * 8)
    tb = max(8, (tb // 8) * 8)

    tiles_per_partial = pl.cdiv(rows_per_partial, tb)
    grid = (np_, tiles_per_partial)

    in_spec = pl.BlockSpec(
        (tb, D), lambda p, t, _T=tiles_per_partial: (p * _T + t, 0))
    out_spec = pl.BlockSpec((8, 128), lambda p, t: (p, 0))

    vmem_need = 3 * 2 * tb * D * esize + 2 * 8 * 128 * 4
    vmem_limit = int(min(max(2 * vmem_need, 16 * 1024 * 1024), 48 * 1024 * 1024))

    kernel = functools.partial(
        _cross_loss_kernel, inv_tao=1.0 / float(tao), batch=B)

    out = pl.pallas_call(
        kernel,
        out_shape=jax.ShapeDtypeStruct((np_ * 8, 128), jnp.float32),
        grid_spec=pltpu.PrefetchScalarGridSpec(
            num_scalar_prefetch=0,
            grid=grid,
            in_specs=[in_spec, in_spec, in_spec],
            out_specs=out_spec,
        ),
        compiler_params=pltpu.CompilerParams(
            dimension_semantics=("parallel", "arbitrary"),
            vmem_limit_bytes=vmem_limit,
        ),
        cost_estimate=pl.CostEstimate(
            flops=10 * B * D,
            transcendentals=5 * B,
            bytes_accessed=3 * B * D * esize,
        ),
    )(vector1, vector2, vector3)

    # Each (8,128) partial block holds its partial sum in every element.
    partials = out.reshape(np_, 8, 128)[:, 0, 0]
    return jnp.sum(partials) / jnp.float32(B)


def _reference_jax(v1, v2, v3, tao):
    # Pure-JAX reference mirroring the (assumed) PyTorch semantics.
    def cos(a, b):
        na = jnp.maximum(jnp.linalg.norm(a, axis=-1), 1e-8)
        nb = jnp.maximum(jnp.linalg.norm(b, axis=-1), 1e-8)
        return jnp.sum(a * b, axis=-1) / (na * nb)

    s12 = cos(v1, v2) / tao
    s13 = cos(v1, v3) / tao
    numerator = jnp.exp(s12)
    denominator = numerator + jnp.exp(s13)
    return -jnp.mean(jnp.log(numerator / denominator))


if __name__ == "__main__":
    key = jax.random.PRNGKey(0)
    k1, k2, k3 = jax.random.split(key, 3)

    # Small but non-trivial: B not a multiple of the tile -> exercises masking,
    # and small block_rows forces a multi-tile pipelined grid.
    B, D = 50, 128
    tao = 0.5

    v1 = jax.random.normal(k1, (B, D), dtype=jnp.float32)
    v2 = jax.random.normal(k2, (B, D), dtype=jnp.float32)
    v3 = jax.random.normal(k3, (B, D), dtype=jnp.float32)

    loss = my_cross_loss(v1, v2, v3, tao=tao, block_rows=16, num_partials=2)
    jax.block_until_ready(loss)

    ref = _reference_jax(v1, v2, v3, tao)
    assert jnp.allclose(loss, ref, rtol=1e-5, atol=1e-5), (loss, ref)

    print("KERNEL_OK")
</pallas_src>

<mosaic_0001>
module attributes {stable_mosaic.version = 11 : i64} {
  func.func @_cross_loss_kernel(%arg0: i32, %arg1: i32, %arg2: memref<16x128xf32, #tpu.memory_space<vmem>>, %arg3: memref<16x128xf32, #tpu.memory_space<vmem>>, %arg4: memref<16x128xf32, #tpu.memory_space<vmem>>, %arg5: memref<8x128xf32, #tpu.memory_space<vmem>>) attributes {dimension_semantics = [#tpu.dimension_semantics<parallel>, #tpu.dimension_semantics<arbitrary>], iteration_bounds = array<i64: 2, 2>, scalar_prefetch = 0 : i64, scratch_operands = 0 : i64, tpu.core_type = #tpu.core_type<tc>, window_params = [{transform_indices = @transform_0, window_bounds = array<i64: 16, 128>}, {transform_indices = @transform_1, window_bounds = array<i64: 16, 128>}, {transform_indices = @transform_2, window_bounds = array<i64: 16, 128>}, {transform_indices = @transform_3, window_bounds = array<i64: 8, 128>}]} {
    %c0_i32 = arith.constant 0 : i32
    %0 = arith.cmpi eq, %arg1, %c0_i32 : i32
    %1 = arith.extui %0 : i1 to i32
    %c0_i32_0 = arith.constant 0 : i32
    %2 = arith.cmpi ne, %1, %c0_i32_0 : i32
    scf.if %2 {
      %cst_23 = arith.constant 0.000000e+00 : f32
      %65 = vector.broadcast %cst_23 : f32 to vector<8x128xf32>
      %c0_24 = arith.constant 0 : index
      %c0_25 = arith.constant 0 : index
      %66 = vector.load %arg5[%c0_24, %c0_25] : memref<8x128xf32, #tpu.memory_space<vmem>>, vector<8x128xf32>
      tpu.vector_store %arg5[%c0_24, %c0_25], %65 {strides = array<i32>} : memref<8x128xf32, #tpu.memory_space<vmem>>, vector<8x128xf32>,
    } else {
    }
    %c0 = arith.constant 0 : index
    %c0_1 = arith.constant 0 : index
    %3 = vector.load %arg2[%c0, %c0_1] : memref<16x128xf32, #tpu.memory_space<vmem>>, vector<16x128xf32>
    %c0_2 = arith.constant 0 : index
    %c0_3 = arith.constant 0 : index
    %4 = vector.load %arg3[%c0_2, %c0_3] : memref<16x128xf32, #tpu.memory_space<vmem>>, vector<16x128xf32>
    %c0_4 = arith.constant 0 : index
    %c0_5 = arith.constant 0 : index
    %5 = vector.load %arg4[%c0_4, %c0_5] : memref<16x128xf32, #tpu.memory_space<vmem>>, vector<16x128xf32>
    %6 = arith.mulf %3, %4 : vector<16x128xf32>
    %cst = arith.constant dense<0.000000e+00> : vector<16xf32>
    %7 = vector.multi_reduction <add>, %6, %cst [1] : vector<16x128xf32> to vector<16xf32>
    %8 = vector.shape_cast %7 : vector<16xf32> to vector<16x1xf32>
    %9 = arith.mulf %3, %5 : vector<16x128xf32>
    %cst_6 = arith.constant dense<0.000000e+00> : vector<16xf32>
    %10 = vector.multi_reduction <add>, %9, %cst_6 [1] : vector<16x128xf32> to vector<16xf32>
    %11 = vector.shape_cast %10 : vector<16xf32> to vector<16x1xf32>
    %12 = arith.mulf %3, %3 : vector<16x128xf32>
    %cst_7 = arith.constant dense<0.000000e+00> : vector<16xf32>
    %13 = vector.multi_reduction <add>, %12, %cst_7 [1] : vector<16x128xf32> to vector<16xf32>
    %14 = vector.shape_cast %13 : vector<16xf32> to vector<16x1xf32>
    %15 = arith.mulf %4, %4 : vector<16x128xf32>
    %cst_8 = arith.constant dense<0.000000e+00> : vector<16xf32>
    %16 = vector.multi_reduction <add>, %15, %cst_8 [1] : vector<16x128xf32> to vector<16xf32>
    %17 = vector.shape_cast %16 : vector<16xf32> to vector<16x1xf32>
    %18 = arith.mulf %5, %5 : vector<16x128xf32>
    %cst_9 = arith.constant dense<0.000000e+00> : vector<16xf32>
    %19 = vector.multi_reduction <add>, %18, %cst_9 [1] : vector<16x128xf32> to vector<16xf32>
    %20 = vector.shape_cast %19 : vector<16xf32> to vector<16x1xf32>
    %cst_10 = arith.constant 1.000000e-16 : f32
    %21 = vector.broadcast %cst_10 : f32 to vector<16x1xf32>
    %22 = arith.maximumf %14, %21 : vector<16x1xf32>
    %23 = math.rsqrt %22 : vector<16x1xf32>
    %cst_11 = arith.constant 1.000000e-16 : f32
    %24 = vector.broadcast %cst_11 : f32 to vector<16x1xf32>
    %25 = arith.maximumf %17, %24 : vector<16x1xf32>
    %26 = math.rsqrt %25 : vector<16x1xf32>
    %cst_12 = arith.constant 1.000000e-16 : f32
    %27 = vector.broadcast %cst_12 : f32 to vector<16x1xf32>
    %28 = arith.maximumf %20, %27 : vector<16x1xf32>
    %29 = math.rsqrt %28 : vector<16x1xf32>
    %30 = arith.mulf %23, %26 : vector<16x1xf32>
    %31 = arith.mulf %8, %30 : vector<16x1xf32>
    %cst_13 = arith.constant 2.000000e+00 : f32
    %32 = vector.broadcast %cst_13 : f32 to vector<16x1xf32>
    %33 = arith.mulf %31, %32 : vector<16x1xf32>
    %34 = arith.mulf %23, %29 : vector<16x1xf32>
    %35 = arith.mulf %11, %34 : vector<16x1xf32>
    %cst_14 = arith.constant 2.000000e+00 : f32
    %36 = vector.broadcast %cst_14 : f32 to vector<16x1xf32>
    %37 = arith.mulf %35, %36 : vector<16x1xf32>
    %38 = arith.subf %37, %33 : vector<16x1xf32>
    %cst_15 = arith.constant 0.000000e+00 : f32
    %39 = vector.broadcast %cst_15 : f32 to vector<16x1xf32>
    %40 = arith.maximumf %38, %39 : vector<16x1xf32>
    %41 = math.absf %38 : vector<16x1xf32>
    %cst_16 = arith.constant 0.000000e+00 : f32
    %42 = vector.broadcast %cst_16 : f32 to vector<16x1xf32>
    %43 = arith.subf %42, %41 : vector<16x1xf32>
    %44 = math.exp %43 : vector<16x1xf32>
    %45 = math.log1p %44 : vector<16x1xf32>
    %46 = arith.addf %40, %45 : vector<16x1xf32>
    %c2_i32 = arith.constant 2 : i32
    %47 = arith.muli %arg0, %c2_i32 : i32
    %48 = arith.addi %47, %arg1 : i32
    %c16_i32 = arith.constant 16 : i32
    %49 = arith.muli %48, %c16_i32 : i32
    %50 = tpu.iota {dimensions = array<i32: 0>} : vector<16x1xi32>
    %51 = vector.broadcast %49 : i32 to vector<16x1xi32>
    %52 = arith.addi %51, %50 : vector<16x1xi32>
    %c50_i32 = arith.constant 50 : i32
    %53 = vector.broadcast %c50_i32 : i32 to vector<16x1xi32>
    %54 = arith.cmpi slt, %52, %53 : vector<16x1xi32>
    %cst_17 = arith.constant 0.000000e+00 : f32
    %55 = vector.broadcast %cst_17 : f32 to vector<16x1xf32>
    %56 = arith.select %54, %46, %55 : vector<16x1xi1>, vector<16x1xf32>
    %c0_18 = arith.constant 0 : index
    %c0_19 = arith.constant 0 : index
    %57 = vector.load %arg5[%c0_18, %c0_19] : memref<8x128xf32, #tpu.memory_space<vmem>>, vector<8x128xf32>
    %58 = vector.shape_cast %56 : vector<16x1xf32> to vector<1x16x1xf32>
    %cst_20 = arith.constant dense<0.000000e+00> : vector<1xf32>
    %59 = vector.multi_reduction <add>, %58, %cst_20 [1, 2] : vector<1x16x1xf32> to vector<1xf32>
    %60 = vector.shape_cast %59 : vector<1xf32> to vector<1x1x1xf32>
    %61 = vector.extract %60[0, 0, 0] : f32 from vector<1x1x1xf32>
    %62 = vector.broadcast %61 : f32 to vector<8x128xf32>
    %63 = arith.addf %57, %62 : vector<8x128xf32>
    %c0_21 = arith.constant 0 : index
    %c0_22 = arith.constant 0 : index
    %64 = vector.load %arg5[%c0_21, %c0_22] : memref<8x128xf32, #tpu.memory_space<vmem>>, vector<8x128xf32>
    tpu.vector_store %arg5[%c0_21, %c0_22], %63 {strides = array<i32>} : memref<8x128xf32, #tpu.memory_space<vmem>>, vector<8x128xf32>,
    return
  }
  func.func @transform_0(%arg0: i32, %arg1: i32) -> (i32, i32) {
    %c2_i32 = arith.constant 2 : i32
    %0 = arith.muli %arg0, %c2_i32 : i32
    %1 = arith.addi %0, %arg1 : i32
    %c0_i32 = arith.constant 0 : i32
    %c0_i32_0 = arith.constant 0 : i32
    return %1, %c0_i32 : i32, i32
  }
  func.func @transform_1(%arg0: i32, %arg1: i32) -> (i32, i32) {
    %c2_i32 = arith.constant 2 : i32
    %0 = arith.muli %arg0, %c2_i32 : i32
    %1 = arith.addi %0, %arg1 : i32
    %c0_i32 = arith.constant 0 : i32
    %c0_i32_0 = arith.constant 0 : i32
    return %1, %c0_i32 : i32, i32
  }
  func.func @transform_2(%arg0: i32, %arg1: i32) -> (i32, i32) {
    %c2_i32 = arith.constant 2 : i32
    %0 = arith.muli %arg0, %c2_i32 : i32
    %1 = arith.addi %0, %arg1 : i32
    %c0_i32 = arith.constant 0 : i32
    %c0_i32_0 = arith.constant 0 : i32
    return %1, %c0_i32 : i32, i32
  }
  func.func @transform_3(%arg0: i32, %arg1: i32) -> (i32, i32) {
    %c0_i32 = arith.constant 0 : i32
    %c0_i32_0 = arith.constant 0 : i32
    return %arg0, %c0_i32 : i32, i32
  }
}

</mosaic_0001>

<bundles_post_ra>
// kernel: tpu_custom_call.1
= control target key start
LH: loop header
LB: loop body
LE: loop exit
PB: predicated region body
PF: predicated region fallthrough
CT: control target
= control target key end

     0   :  { %s1330_s0 = inlined_call_operand.hbm [shape: f32[50,128], index: 0, kind: input, shape index: {}]   ;;  %s1331_s1 = inlined_call_operand.hbm [shape: f32[50,128], index: 1, kind: input, shape index: {}]   ;;  %s1332_s2 = inlined_call_operand.hbm [shape: f32[50,128], index: 2, kind: input, shape index: {}]   ;;  %s1333_s3 = inlined_call_operand.hbm [shape: f32[16,128], index: 3, kind: output, shape index: {}]  }
   0x1   :  { %1338 = sst [smem:[#allocation18_spill]] %s1330_s0 }
   0x2   :  { %8 = vsyncpa [#allocation3], 0 }
   0x3   :  { %10 = vsyncpa [#allocation3 + $0x1], 0 }
   0x4   :  { %11 = vsyncpa [#allocation6], 0 }
   0x5   :  { %13 = vsyncpa [#allocation6 + $0x1], 0 }
   0x6   :  { %14 = vsyncpa [#allocation4], 0 }
   0x7   :  { %16 = vsyncpa [#allocation4 + $0x1], 0  ;;  %s1017_s12 = smov 0   ;;  %s1019_s13 = smov 0  }
   0x8   :  { %s1021_s14 = smov 0   ;;  %s1023_s15 = smov 0  }
   0x9   :  { %s1025_s16 = smov 0   ;;  %s1027_s17 = smov 0  }
   0xa   :  { %s1029_s18 = smov 0   ;;  %s1031_s19 = smov 0  }
   0xb   :  { %s1033_s20 = smov 0   ;;  %s1035_s21 = smov 0  }
   0xc   :  { %s1037_s22 = smov 0  }
   0xd LB: > { %1339 = sst [smem:[#allocation12_spill]] %s976_s20  ;;  %s1071_s23 = sadd.s32 4294967295, %s984_s22   ;;  %s984_s22 = sphi %s1037_s22, %s22_s22   ;;  %s980_s21 = sphi %s1035_s21, %s1365_s21   ;;  %s976_s20 = sphi %s1033_s20, %s1364_s20   ;;  %s972_s19 = sphi %s1031_s19, %s1354_s19   ;;  %s968_s18 = sphi %s1029_s18, %s1363_s18   ;;  %s964_s17 = sphi %s1027_s17, %s1362_s17   ;;  %s960_s16 = sphi %s1025_s16, %s1361_s16   ;;  %s956_s15 = sphi %s1023_s15, %s1360_s15   ;;  %s952_s14 = sphi %s1021_s14, %s1359_s14   ;;  %s948_s13 = sphi %s1019_s13, %s1358_s13   ;;  %s944_s12 = sphi %s1017_s12, %s1357_s12  }
   0xe   : > { %1340 = sst [smem:[#allocation13_spill]] %s980_s21  ;;  %s607_s24 = sadd.s32 4294967294, %s984_s22  }
   0xf   : > { %s31_s25 = sadd.s32 1, %s976_s20  ;;  %s34_s26 = sadd.s32 1, %s980_s21 }
  0x10   : > { %p32_p0 = scmp.ge.s32.totalorder %s31_s25, 2  ;;  %s608_s27 = sshll.u32 %s980_s21, 1 }
  0x11   : > { %s1078_s28 = sadd.s32 %s976_s20, %s608_s27  ;;  %s45_s29 = sadd.s32 1, %s964_s17 }
  0x12   : > { %s1367_s25 = smov (%p32_p0, %s31_s25), 0  ;;  %s1369_s26 = smov (!%p32_p0, %s34_s26), %s980_s21 }
  0x13   : > { %1341 = sst [smem:[#allocation14_spill]] %s1367_s25  ;;  %p52_p1 = scmp.ne.s32.totalorder %s964_s17, %s960_s16 }
  0x14   : > { %p53_p2 = scmp.eq.s32.totalorder %s984_s22, 0  ;;  %p36_p3 = scmp.ge.s32.totalorder %s1369_s26, 2 }
  0x15   : > { %p58_p4 = scmp.ne.s32.totalorder %s960_s16, %s956_s15  ;;  %p59_p6 = scmp.eq.s32.totalorder %s1071_s23, 0 }
  0x16   : > { %p1088_p5 = por %p53_p2, %p52_p1  ;;  %s1371_s26 = smov (%p36_p3, %s1369_s26), 0 }
  0x17   : > { %1343 = sst [smem:[#allocation15_spill]] %s1371_s26  ;;  %p1095_p7 = por %p59_p6, %p58_p4 }
  0x18   : > { %s131_s5 = sadd.s32 1, %s952_s14  ;;  %s609_s6 = sshll.u32 %s1371_s26, 1 }
  0x19   : > { %s128_s7 = ssub.s32 %s980_s21, %s1371_s26  ;;  %s41_s8 = sadd.s32 %s609_s6, %s1367_s25 }
  0x1a   : > { %p129_p8 = scmp.eq.s32.totalorder %s128_s7, 0  ;;  %s42_s9 = ssub.s32 %s1078_s28, %s41_s8 }
  0x1b   : > { %p141_p9 = scmp.ne.s32.totalorder %s952_s14, %s948_s13  ;;  %p43_p10 = scmp.eq.s32.totalorder %s42_s9, 0 }
  0x1c   : > { %p142_p11 = scmp.eq.s32.totalorder %s1071_s23, 3  ;;  %p147_p13 = scmp.ne.s32.totalorder %s948_s13, %s944_s12 }
  0x1d   : > { %s1109_s10 = scalar_select %p129_p8, %s952_s14, %s131_s5  }
  0x1e   : > { %s1112_s11 = scalar_select %p43_p10, %s964_s17, %s45_s29  }
  0x1f   : > { %1345 = sst [smem:[#allocation16_spill]] %s1109_s10  ;;  %p1114_p12 = por %p142_p11, %p141_p9 }
  0x20   : > { %1346 = sst [smem:[#allocation17_spill]] %s1112_s11  ;;  %p148_p0 = scmp.eq.s32.totalorder %s607_s24, 3 }
  0x21   : > { %p615_p2 = scmp.ge.s32.totalorder %s984_s22, 4 }
  0x22   : > { %p1122_p1 = por %p148_p0, %p147_p13 }
  0x23   : > { %164 = sbr.rel (%p615_p2) target bundleno = 142 (0x8e), region = 16 }
  0x24   : > { %s1348_s27 = scalar_select %p1122_p1, 1, 0 }
  0x28   : > { %167 = sbr.rel (!%p1088_p5) target bundleno = 78 (0x4e), region = 20  ;;  %s168_s29 = sand.u32 (%p1088_p5), 1, %s964_s17  }
  0x29   : > { %s618_s5 = sshll.u32 (%p1088_p5), %s1078_s28, 1  ;;  %s616_s6 = sshll.u32 (%p1088_p5), %s168_s29, 4 }
  0x2a   : > { %s176_s7 = ssub.s32 (%p1088_p5), 7, %s618_s5  ;;  %s1134_s9 = scalar_lea.sflag (%p1088_p5), [#allocation3], %s168_s29 }
  0x2b   : > { %p177_p3 = scmp.lt.s32.totalorder (%p1088_p5), %s176_s7, 2  ;;  %s172_s26 = scalar_lea.vmem (%p1088_p5), [#allocation2], %s616_s6 }
  0x2d   : > { %s1373_s7 = smov (!%p177_p3, %s176_s7), 2 }
  0x2e   : > { %s1131_s8 = sshll.u32 %s1373_s7, 7 }
  0x2f   : > { %s181_s24 = ssub.s32 256, %s1131_s8 }
  0x30   : > { %182 = vsyncadd %s1134_s9, %s181_s24  ;;  %p620_p4 = scmp.ne.s32.totalorder %s1131_s8, 0  ;;  %s652_s25 = sshll.u32 %s1078_s28, 8 }
  0x31   : > { %s1349_s0 = sld [smem:[#allocation18_spill]]  ;;  %s187_s7 = sshll.u32 %s172_s26, 4  ;;  %s1144_s7 = int_to_ptr.vmem [resolvable:$true] %s187_s7 }
  0x37   : > { %s1142_s5 = scalar_lea.hbm %s1349_s0, %s652_s25  ;;  %s786_s11 = scalar_lea.hbm %s1349_s0, 896 }
  0x38   : > { %s782_s29 = scalar_lea.hbm %s1142_s5, %s1131_s8 }
  0x39   : > { %p783_p6 = scmp.ne.s32.totalorder %s1142_s5, %s782_s29  ;;  %p788_p10 = scmp.lt.s32.totalorder %s786_s11, %s782_s29 }
  0x3b   : > { %p784_p8 = pnand %p783_p6, %p620_p4 }
  0x3d   : > { %p785_p9 = pneg %p784_p8 }
  0x3f   : > { %p790_p11 = pnand %p788_p10, %p785_p9 }
  0x41   : > { %793 = shalt.err (!%p790_p11)
}
  0x42   : > { %s794_s20 = scalar_lea.vmem %s1144_s7, %s1131_s8  ;;  %s986_s21 = smov [#allocation2]  }
  0x43   : > { %p795_p13 = scmp.ne.s32.totalorder %s1144_s7, %s794_s20  ;;  %s798_s25 = sshll.u32 %s986_s21, 4  ;;  %s799_s25 = int_to_ptr.vmem [resolvable:$false] %s798_s25 }
  0x44   : > { %s800_s26 = scalar_lea.vmem %s799_s25, 512  ;;  %p801_p3 = scmp.lt.s32.totalorder %s1144_s7, %s799_s25 }
  0x45   : > { %p796_p0 = pnand %p795_p13, %p620_p4  ;;  %p802_p6 = scmp.lt.s32.totalorder %s800_s26, %s794_s20 }
  0x47   : > { %p797_p2 = pneg %p796_p0  ;;  %p803_p8 = por %p802_p6, %p801_p3 }
  0x49   : > { %p804_p1 = pnand %p803_p8, %p797_p2 }
  0x4b   : > { %807 = shalt.err (!%p804_p1)
}
  0x4c   : > { %s987_s11 = smov 128   ;;  %s988_s29 = smov 8  }
  0x4d   : > { %193 = dma.hbm_to_vmem [thread:$0]  (%p620_p4), %s1142_s5, %s1131_s8, %s1144_s7, %s1134_s9, %s987_s11, %s987_s11, %s988_s29  }
  0x4e PF: > { %196 = sbr.rel (!%p1088_p5) target bundleno = 110 (0x6e), region = 24  ;;  %s197_s6 = sand.u32 (%p1088_p5), 1, %s984_s22  }
  0x4f   : > { %s199_s24 = sand.u32 (%p1088_p5), 1, %s964_s17   ;;  %s626_s21 = sshll.u32 (%p1088_p5), %s1078_s28, 1 }
  0x50   : > { %s624_s20 = sshll.u32 (%p1088_p5), %s199_s24, 4  ;;  %s205_s25 = ssub.s32 (%p1088_p5), 7, %s626_s21 }
  0x51   : > { %p206_p1 = scmp.lt.s32.totalorder (%p1088_p5), %s205_s25, 2  ;;  %s1174_s10 = scalar_lea.sflag (%p1088_p5), [#allocation6], %s197_s6 }
  0x52   : > { %s201_s8 = scalar_lea.vmem (%p1088_p5), [#allocation5], %s624_s20 }
  0x53   : > { %s1375_s25 = smov (!%p206_p1, %s205_s25), 2 }
  0x54   : > { %s1171_s26 = sshll.u32 %s1375_s25, 7 }
  0x55   : > { %s210_s0 = ssub.s32 256, %s1171_s26 }
  0x56   : > { %211 = vsyncadd %s1174_s10, %s210_s0  ;;  %p628_p4 = scmp.ne.s32.totalorder %s1171_s26, 0  ;;  %s653_s9 = sshll.u32 %s1078_s28, 8 }
  0x57   : > { %s1182_s11 = scalar_lea.hbm %s1331_s1, %s653_s9  ;;  %s216_s29 = sshll.u32 %s201_s8, 4  ;;  %s1184_s29 = int_to_ptr.vmem [resolvable:$true] %s216_s29 }
  0x58   : > { %s808_s6 = scalar_lea.hbm %s1182_s11, %s1171_s26  ;;  %s812_s20 = scalar_lea.hbm %s1331_s1, 896 }
  0x59   : > { %p809_p9 = scmp.ne.s32.totalorder %s1182_s11, %s808_s6  ;;  %p814_p13 = scmp.lt.s32.totalorder %s812_s20, %s808_s6 }
  0x5b   : > { %p810_p10 = pnand %p809_p9, %p628_p4 }
  0x5d   : > { %p811_p11 = pneg %p810_p10 }
  0x5f   : > { %p816_p0 = pnand %p814_p13, %p811_p11 }
  0x61   : > { %819 = shalt.err (!%p816_p0)
}
  0x62   : > { %s820_s21 = scalar_lea.vmem %s1184_s29, %s1171_s26  ;;  %s989_s25 = smov [#allocation5]  }
  0x63   : > { %p821_p2 = scmp.ne.s32.totalorder %s1184_s29, %s820_s21  ;;  %s824_s8 = sshll.u32 %s989_s25, 4  ;;  %s825_s8 = int_to_ptr.vmem [resolvable:$false] %s824_s8 }
  0x64   : > { %s826_s9 = scalar_lea.vmem %s825_s8, 512  ;;  %p827_p8 = scmp.lt.s32.totalorder %s1184_s29, %s825_s8 }
  0x65   : > { %p822_p3 = pnand %p821_p2, %p628_p4  ;;  %p828_p1 = scmp.lt.s32.totalorder %s826_s9, %s820_s21 }
  0x67   : > { %p823_p6 = pneg %p822_p3  ;;  %p829_p9 = por %p828_p1, %p827_p8 }
  0x69   : > { %p830_p10 = pnand %p829_p9, %p823_p6 }
  0x6b   : > { %833 = shalt.err (!%p830_p10)
}
  0x6c   : > { %s990_s5 = smov 128   ;;  %s991_s7 = smov 8  }
  0x6d   : > { %222 = dma.hbm_to_vmem [thread:$0]  (%p628_p4), %s1182_s11, %s1171_s26, %s1184_s29, %s1174_s10, %s990_s5, %s990_s5, %s991_s7  }
  0x6e PF: > { %225 = sbr.rel (!%p1088_p5) target bundleno = 142 (0x8e), region = 28  ;;  %s226_s6 = sand.u32 (%p1088_p5), 1, %s984_s22  }
  0x6f   : > { %s228_s0 = sand.u32 (%p1088_p5), 1, %s964_s17   ;;  %s634_s20 = sshll.u32 (%p1088_p5), %s1078_s28, 1 }
  0x70   : > { %s632_s24 = sshll.u32 (%p1088_p5), %s228_s0, 4  ;;  %s234_s21 = ssub.s32 (%p1088_p5), 7, %s634_s20 }
  0x71   : > { %p235_p11 = scmp.lt.s32.totalorder (%p1088_p5), %s234_s21, 2  ;;  %s1214_s9 = scalar_lea.sflag (%p1088_p5), [#allocation6], %s226_s6 }
  0x72   : > { %s230_s10 = scalar_lea.vmem (%p1088_p5), [#allocation7], %s632_s24 }
  0x73   : > { %s1377_s21 = smov (!%p235_p11, %s234_s21), 2 }
  0x74   : > { %s1211_s25 = sshll.u32 %s1377_s21, 7 }
  0x75   : > { %s239_s8 = ssub.s32 256, %s1211_s25 }
  0x76   : > { %240 = vsyncadd %s1214_s9, %s239_s8  ;;  %p636_p5 = scmp.ne.s32.totalorder %s1211_s25, 0  ;;  %s654_s30 = sshll.u32 %s1078_s28, 8 }
  0x77   : > { %s1222_s29 = scalar_lea.hbm %s1332_s2, %s654_s30  ;;  %s245_s5 = sshll.u32 %s230_s10, 4  ;;  %s1224_s5 = int_to_ptr.vmem [resolvable:$true] %s245_s5 }
  0x78   : > { %s834_s7 = scalar_lea.hbm %s1222_s29, %s1211_s25  ;;  %s838_s24 = scalar_lea.hbm %s1332_s2, 896 }
  0x79   : > { %p835_p4 = scmp.ne.s32.totalorder %s1222_s29, %s834_s7  ;;  %p840_p2 = scmp.lt.s32.totalorder %s838_s24, %s834_s7 }
  0x7b   : > { %p836_p13 = pnand %p835_p4, %p636_p5 }
  0x7d   : > { %p837_p0 = pneg %p836_p13 }
  0x7f   : > { %p842_p3 = pnand %p840_p2, %p837_p0 }
  0x81   : > { %845 = shalt.err (!%p842_p3)
}
  0x82   : > { %s846_s28 = scalar_lea.vmem %s1224_s5, %s1211_s25  ;;  %s992_s20 = smov [#allocation7]  }
  0x83   : > { %p847_p6 = scmp.ne.s32.totalorder %s1224_s5, %s846_s28  ;;  %s850_s21 = sshll.u32 %s992_s20, 4  ;;  %s851_s21 = int_to_ptr.vmem [resolvable:$false] %s850_s21 }
  0x84   : > { %s852_s8 = scalar_lea.vmem %s851_s21, 512  ;;  %p853_p9 = scmp.lt.s32.totalorder %s1224_s5, %s851_s21 }
  0x85   : > { %p848_p8 = pnand %p847_p6, %p636_p5  ;;  %p854_p10 = scmp.lt.s32.totalorder %s852_s8, %s846_s28 }
  0x87   : > { %p849_p1 = pneg %p848_p8  ;;  %p855_p11 = por %p854_p10, %p853_p9 }
  0x89   : > { %p856_p4 = pnand %p855_p11, %p849_p1 }
  0x8b   : > { %859 = shalt.err (!%p856_p4)
}
  0x8c   : > { %s993_s10 = smov 128   ;;  %s994_s30 = smov 8  }
  0x8d   : > { %251 = dma.hbm_to_vmem [thread:$0]  (%p636_p5), %s1222_s29, %s1211_s25, %s1224_s5, %s1214_s9, %s993_s10, %s993_s10, %s994_s30  }
  0x8e PF: > { %p640_p13 = scmp.ge.s32.totalorder %s984_s22, 1  ;;  %p253_p0 = scmp.lt.s32.totalorder %s984_s22, 5 }
  0x90   : > { %p254_p2 = pnand %p640_p13, %p253_p0 }
  0x91   : > { %s259_s26 = sand.u32 (!%p254_p2), 1, %s960_s16  }
  0x92   : > { %257 = sbr.rel (%p254_p2) target bundleno = 600 (0x258), region = 32  ;;  %s1249_s11 = sshll.u32 (!%p254_p2), %s259_s26, 4 }
  0x93   : > { %s260_s7 = scalar_lea.sflag (!%p254_p2), [#allocation3], %s259_s26  ;;  %s263_s6 = scalar_lea.vmem (!%p254_p2), [#allocation2], %s1249_s11 }
  0x97   : > { %931 = dma.done.wait (%p1095_p7), %s260_s7, 256  }
  0x98   : > { %933 = vsyncadd (%p1095_p7), %s260_s7, 4294967040  ;;  %s268_s25 = sand.u32 1, %s1071_s23   ;;  %s272_s29 = scalar_lea.vmem [#allocation5], %s1249_s11 }
  0x99   : > { %s269_s9 = scalar_lea.sflag [#allocation6], %s268_s25 }
  0x9a   : > { %935 = dma.done.wait (%p1095_p7), %s269_s9, 512  }
  0x9b   : > { %937 = vsyncadd (%p1095_p7), %s269_s9, 4294966784  ;;  %s311_s5 = sand.u32 1, %s948_s13   ;;  %s281_s24 = scalar_lea.vmem [#allocation7], %s1249_s11 }
  0x9c   : > { %s644_s0 = sshll.u32 %s311_s5, 3  ;;  %p645_p5 = scmp.ne.s32.totalorder %s968_s18, 0 }
  0x9d   : > { %s1266_s28 = scalar_lea.vmem [#allocation8], %s644_s0 }
  0x9e   : > { %338 = sbr.rel (%p645_p5) target bundleno = 165 (0xa5), region = 48 }
  0xa3   : > { %v995_v0 = vmov 0.0  }
  0xa4   : > { %339 = vst [vmem:[%s1266_s28] sm:$0xff] %v995_v0 }
  0xa5 PF: > { %v342_v1 = vld [vmem:[%s272_s29] sm:$0xff]  ;;  %v343_v3 = vld [vmem:[%s272_s29 + $0x8] sm:$0xff]  ;;  %s646_s23 = sshll.u32 %s972_s19, 1  ;;  %v435_v63 = vlaneseq  ;;  %vm446_vm4 = vcmask 7168   ;;  %s476_s21 = sshll.u32 %s1266_s28, 4  ;;  %s477_s21 = int_to_ptr.vmem [resolvable:$true] %s476_s21 }
  0xa6   : > { %v340_v2 = vld [vmem:[%s263_s6] sm:$0xff]  ;;  %v364_v4 = vmul.f32 %v342_v1, %v342_v1  ;;  %v341_v6 = vld [vmem:[%s263_s6 + $0x8] sm:$0xff]  ;;  %v365_v7 = vmul.f32 %v343_v3, %v343_v3  ;;  %s433_s4 = sadd.s32 %s968_s18, %s646_s23  ;;  %s649_s18 = sshll.u32 %s972_s19, 7 }
  0xa7   : > { %v358_v5 = vmul.f32 %v340_v2, %v340_v2  ;;  %v359_v8 = vmul.f32 %v341_v6, %v341_v6  ;;  %v345_v9 = vld [vmem:[%s281_s24 + $0x8] sm:$0xff]  ;;  %v344_v10 = vld [vmem:[%s281_s24] sm:$0xff]  ;;  %v346_v13 = vmul.f32 %v342_v1, %v340_v2  ;;  %v347_v14 = vmul.f32 %v343_v3, %v341_v6  ;;  %s647_s20 = sshll.u32 %s433_s4, 4  ;;  %s474_s26 = scalar_lea.hbm %s1333_s3, %s649_s18 }
  0xa8   : > { %366 = vadd.xlane.f32.xlu1 %v364_v4  ;;  %v371_v11 = vmul.f32 %v345_v9, %v345_v9  ;;  %v370_v12 = vmul.f32 %v344_v10, %v344_v10  ;;  %v353_v15 = vmul.f32 %v345_v9, %v341_v6  ;;  %v352_v16 = vmul.f32 %v344_v10, %v340_v2  ;;  %s463_s11 = scalar_lea.sflag [#allocation4], %s311_s5  ;;  %s860_s7 = scalar_lea.vmem %s477_s21, 128 }
  0xa9   : > { %360 = vadd.xlane.f32.xlu0 %v358_v5  ;;  %v436_v0 = vshrl.u32 %v435_v63, 7  ;;  %v438_v4 = vstv %s647_s20  ;;  %p861_p7 = scmp.ne.s32.totalorder %s477_s21, %s860_s7  ;;  %s996_s6 = smov [#allocation8]  }
  0xaa   : > { %s864_s25 = sshll.u32 %s996_s6, 4  ;;  %s865_s25 = int_to_ptr.vmem [resolvable:$false] %s864_s25 }
  0xab   : > { %v437_v3 = vadd.s32 8, %v436_v0  ;;  %p862_p3 = pnand %p861_p7, %p1114_p12  ;;  %s866_s19 = scalar_lea.vmem %s865_s25, 256 }
  0xac   : > { %368 = vadd.xlane.f32.xlu1 %v365_v7  ;;  %p867_p8 = scmp.lt.s32.totalorder %s477_s21, %s865_s25  ;;  %p868_p1 = scmp.lt.s32.totalorder %s866_s19, %s860_s7 }
  0xad   : > { %362 = vadd.xlane.f32.xlu0 %v359_v8  ;;  %v440_v9 = vadd.s32 %v438_v4, %v437_v3  ;;  %p863_p6 = pneg %p862_p3 }
  0xae   : > { %p869_p9 = por %p868_p1, %p867_p8 }
  0xaf   : > { %vm442_vm2 = vcmp.lt.s32.totalorder %v440_v9, 50 }
  0xb0   : > { %374 = vadd.xlane.f32.xlu1 %v371_v11  ;;  %v439_v11 = vadd.s32 %v438_v4, %v436_v0  ;;  %p870_p10 = pnand %p869_p9, %p863_p6 }
  0xb1   : > { %372 = vadd.xlane.f32.xlu0 %v370_v12 }
  0xb2   : > { %vm441_vm3 = vcmp.lt.s32.totalorder %v439_v11, 50 }
  0xb4   : > { %350 = vadd.xlane.f32.xlu1 %v347_v14 }
  0xb5   : > { %348 = vadd.xlane.f32.xlu0 %v346_v13 }
  0xb8   : > { %356 = vadd.xlane.f32.xlu1 %v353_v15 }
  0xb9   : > { %354 = vadd.xlane.f32.xlu0 %v352_v16 }
 0x131   : > { %v367_v17 = vpop.xlane.xlu1 %366 }
 0x132   : > { %v361_v18 = vpop.xlane.xlu0 %360  ;;  %v380_v19 = vmax.f32 %v367_v17, 1e-16 }
 0x133   : > { %v376_v20 = vmax.f32 %v361_v18, 1e-16 }
 0x134   : > { %762 = vrsqrt.f32 %v380_v19 }
 0x135   : > { %v369_v21 = vpop.xlane.xlu1 %368  ;;  %764 = vrsqrt.f32 %v376_v20 }
 0x136   : > { %v363_v22 = vpop.xlane.xlu0 %362  ;;  %v381_v23 = vmax.f32 %v369_v21, 1e-16 }
 0x137   : > { %v377_v24 = vmax.f32 %v363_v22, 1e-16 }
 0x138   : > { %766 = vrsqrt.f32 %v381_v23 }
 0x139   : > { %768 = vrsqrt.f32 %v377_v24  ;;  %v375_v25 = vpop.xlane.xlu1 %374 }
 0x13a   : > { %v373_v26 = vpop.xlane.xlu0 %372  ;;  %v385_v27 = vmax.f32 %v375_v25, 1e-16 }
 0x13b   : > { %v384_v28 = vmax.f32 %v373_v26, 1e-16 }
 0x13c   : > { %770 = vrsqrt.f32 %v385_v27 }
 0x13d   : > { %772 = vrsqrt.f32 %v384_v28  ;;  %v351_v30 = vpop.xlane.xlu1 %350 }
 0x13e   : > { %v349_v34 = vpop.xlane.xlu0 %348 }
 0x141   : > { %v763_v29 = vpop.eup %762  ;;  %v357_v38 = vpop.xlane.xlu1 %356 }
 0x142   : > { %v765_v31 = vpop.eup %764  ;;  %v355_v42 = vpop.xlane.xlu0 %354 }
 0x143   : > { %v388_v35 = vmul.f32 %v765_v31, %v763_v29 }
 0x145   : > { %v767_v32 = vpop.eup %766  ;;  %v390_v43 = vmul.f32 %v388_v35, %v349_v34  ;;  %v445_v35 = vld [vmem:[%s1266_s28] sm:$0xff] }
 0x146   : > { %v769_v33 = vpop.eup %768 }
 0x147   : > { %v389_v36 = vmul.f32 %v769_v33, %v767_v32  ;;  %v392_v49 = vmul.f32 2.0, %v390_v43 }
 0x149   : > { %v771_v37 = vpop.eup %770  ;;  %v391_v40 = vmul.f32 %v389_v36, %v351_v30 }
 0x14a   : > { %v773_v39 = vpop.eup %772  ;;  %v395_v41 = vmul.f32 %v771_v37, %v769_v33 }
 0x14b   : > { %v394_v44 = vmul.f32 %v773_v39, %v765_v31  ;;  %v393_v47 = vmul.f32 2.0, %v391_v40 }
 0x14c   : > { %v397_v45 = vmul.f32 %v395_v41, %v357_v38 }
 0x14d   : > { %v396_v46 = vmul.f32 %v394_v44, %v355_v42 }
 0x14e   : > { %v399_v48 = vmul.f32 2.0, %v397_v45 }
 0x14f   : > { %v398_v50 = vmul.f32 2.0, %v396_v46 }
 0x150   : > { %v401_v51 = vsub.f32 %v399_v48, %v393_v47 }
 0x151   : > { %v400_v52 = vsub.f32 %v398_v50, %v392_v49 }
 0x152   : > { %v405_v53 = vand.u32 2147483647, %v401_v51  ;;  %v403_v15 = vmax.f32 %v401_v51, 0.0 }
 0x153   : > { %v404_v54 = vand.u32 2147483647, %v400_v52  ;;  %v402_v18 = vmax.f32 %v400_v52, 0.0 }
 0x154   : > { %v407_v55 = vsub.f32 0.0, %v405_v53 }
 0x155   : > { %v406_v56 = vsub.f32 0.0, %v404_v54 }
 0x156   : > { %v410_v57 = vmul.f32 1.442695, %v407_v55 }
 0x157   : > { %v408_v58 = vmul.f32 1.442695, %v406_v56 }
 0x158   : > { %774 = vpow2.f32 %v410_v57 }
 0x159   : > { %776 = vpow2.f32 %v408_v58 }
 0x165   : > { %v775_v59 = vpop.eup %774 }
 0x166   : > { %v777_v60 = vpop.eup %776  ;;  %v421_v61 = vadd.f32 1.0, %v775_v59  ;;  %v424_v1 = vmul.f32 -0.5, %v775_v59  ;;  %v427_v7 = vand.u32 2147483647, %v775_v59 }
 0x167   : > { %v412_v62 = vadd.f32 1.0, %v777_v60  ;;  %v415_v2 = vmul.f32 -0.5, %v777_v60  ;;  %v418_v8 = vand.u32 2147483647, %v777_v60 }
 0x168   : > { %778 = vlog2.f32 %v421_v61  ;;  %v425_v5 = vadd.f32 1.0, %v424_v1  ;;  %vm428_vm0 = vcmp.lt.f32.partialorder %v427_v7, 0.0004427343 }
 0x169   : > { %780 = vlog2.f32 %v412_v62  ;;  %v416_v6 = vadd.f32 1.0, %v415_v2  ;;  %vm419_vm1 = vcmp.lt.f32.partialorder %v418_v8, 0.0004427343 }
 0x16a   : > { %v426_v14 = vmul.f32 %v775_v59, %v425_v5 }
 0x16b   : > { %v417_v17 = vmul.f32 %v777_v60, %v416_v6 }
 0x175   : > { %v779_v10 = vpop.eup %778 }
 0x176   : > { %v781_v12 = vpop.eup %780  ;;  %v423_v13 = vmul.f32 0.6931472, %v779_v10 }
 0x177   : > { %v414_v16 = vmul.f32 0.6931472, %v781_v12 }
 0x178   : > { %v429_v19 = vsel %vm428_vm0, %v426_v14, %v423_v13 }
 0x179   : > { %v420_v20 = vsel %vm419_vm1, %v417_v17, %v414_v16  ;;  %v431_v21 = vadd.f32 %v429_v19, %v403_v15 }
 0x17a   : > { %v430_v22 = vadd.f32 %v420_v20, %v402_v18 }
 0x17b   : > { %v444_v23 = vsel %vm442_vm2, %v431_v21, 0.0 }
 0x17c   : > { %v443_v24 = vsel %vm441_vm3, %v430_v22, 0.0  ;;  %v448_v25 = vsel %vm446_vm4, %v444_v23, 0.0 }
 0x17d   : > { %v447_v26 = vsel %vm446_vm4, %v443_v24, 0.0 }
 0x17e   : > { %v449_v27 = vadd.f32 %v448_v25, %v447_v26 }
 0x180   : > { %450 = vadd.xlane.f32.xlu0 %v449_v27 }
 0x209   : > { %v451_v28 = vpop.xlane.xlu0 %450 }
 0x20a   : > { %v452_v29 = vrot.slane %v451_v28, 4 }
 0x20c   : > { %v453_v30 = vadd.f32 %v452_v29, %v451_v28 }
 0x20e   : > { %v454_v31 = vrot.slane %v453_v30, 2 }
 0x210   : > { %v455_v32 = vadd.f32 %v454_v31, %v453_v30 }
 0x212   : > { %v456_v33 = vrot.slane %v455_v32, 1 }
 0x214   : > { %v457_v34 = vadd.f32 %v456_v33, %v455_v32 }
 0x216   : > { %655 = vpush %v457_v34 }
 0x247   : > { %s656_s8 = spop %655 }
 0x248   : > { %v459_v36 = vstv %s656_s8 }
 0x249   : > { %v460_v37 = vadd.f32 %v459_v36, %v445_v35 }
 0x24b   : > { %461 = vst [vmem:[%s1266_s28] sm:$0xff] %v460_v37 }
 0x24c   : > { %873 = shalt.err (!%p870_p10)
}
 0x24d   : > { %s874_s9 = scalar_lea.hbm %s474_s26, 128  ;;  %s878_s0 = scalar_lea.hbm %s1333_s3, 256 }
 0x24e   : > { %p875_p11 = scmp.ne.s32.totalorder %s474_s26, %s874_s9  ;;  %p879_p0 = scmp.lt.s32.totalorder %s474_s26, %s1333_s3 }
 0x24f   : > { %p880_p2 = scmp.lt.s32.totalorder %s878_s0, %s874_s9 }
 0x250   : > { %p876_p4 = pnand %p875_p11, %p1114_p12 }
 0x251   : > { %p881_p5 = por %p880_p2, %p879_p0 }
 0x252   : > { %p877_p13 = pneg %p876_p4 }
 0x254   : > { %p882_p7 = pnand %p881_p5, %p877_p13 }
 0x256   : > { %885 = shalt.err (!%p882_p7)
}
 0x257   : > { %660 = dma.vmem_to_hbm [thread:$0]  (%p1114_p12), %s477_s21, 128, %s474_s26, %s463_s11  }
 0x258 PF: > { %p666_p3 = scmp.ge.s32.totalorder %s984_s22, 2  ;;  %s488_s23 = sand.u32 1, %s944_s12  }
 0x259   : > { %p1350_p6 = scmp.ne.s32.totalorder %s1348_s27, 0  ;;  %s489_s4 = scalar_lea.sflag [#allocation4], %s488_s23 }
 0x25b   : > { %p663_p8 = pnand %p666_p3, %p1350_p6 }
 0x25d   : > { %p664_p1 = pneg %p663_p8 }
 0x25f   : > { %939 = dma.done.wait (%p664_p1), %s489_s4, 128  }
 0x260   : > { %941 = vsyncadd (%p664_p1), %s489_s4, 4294967168  ;;  %s22_s22 = sadd.s32 1, %s984_s22   ;;  %s1351_s20 = sld [smem:[#allocation16_spill]] }
 0x261   : > { %p19_p9 = scmp.ge.s32.totalorder %s22_s22, 6   ;;  %s1352_s18 = sld [smem:[#allocation17_spill]] }
 0x262   : > { %s1353_s21 = sld [smem:[#allocation12_spill]]  ;;  %s1357_s12 = smov %s948_s13 }
 0x263   : > { %s1354_s19 = sld [smem:[#allocation13_spill]]  ;;  %s1358_s13 = smov %s952_s14 }
 0x264   : > { %s1355_s8 = sld [smem:[#allocation14_spill]]  ;;  %s1360_s15 = smov %s960_s16 }
 0x265   : > { %s1356_s10 = sld [smem:[#allocation15_spill]]  ;;  %s1361_s16 = smov %s964_s17 }
 0x266   : > { %s1359_s14 = smov %s1351_s20 }
 0x267   : > { %s1362_s17 = smov %s1352_s18  ;;  %21 = sbr.rel (!%p19_p9) target bundleno = 13 (0xd), region = 105 }
 0x268   : > { %s1363_s18 = smov %s1353_s21 }
 0x26a   : > { %s1364_s20 = smov %s1355_s8 }
 0x26b   : > { %s1365_s21 = smov %s1356_s10 }
 0x26c   :  { %494 = vsyncpa [#allocation3], 1 }
 0x26d   :  { %496 = vsyncpa [#allocation3 + $0x1], 1 }
 0x26e   :  { %497 = vsyncpa [#allocation6], 1 }
 0x26f   :  { %499 = vsyncpa [#allocation6 + $0x1], 1 }
 0x270   :  { %500 = vsyncpa [#allocation4], 1 }
 0x271   :  { %502 = vsyncpa [#allocation4 + $0x1], 1 }

</bundles_post_ra>
